<compile_context>
chip_gen: v6e
topology: v6e:2x2x1
jax: 0.10.0
libtpu: 0.0.40
codegen_flags: <defaults>
</compile_context>

<pallas_src>
import functools

import jax
import jax.numpy as jnp
from jax import lax
from jax.experimental import pallas as pl
from jax.experimental.pallas import tpu as pltpu

EPS = 1e-5  # nn.InstanceNorm2d default eps


def _two_conv_block_in_kernel(x_ref, g1_ref, b1_ref, g2_ref, b2_ref,
                              row_ref, col_ref, w_ref, o_ref, acat_ref, *, H, W):
    # x_ref:    (1, Cin, HW)    one batch element, spatial flattened onto lanes
    # g*/b*:    (Cin, 1)        instance-norm affine params (channels on sublanes)
    # row/col:  (1, HW) int32   spatial row / column index of each lane position
    # w_ref:    (Cout, 10*Cin)  [w1 | 9 taps of w2] stacked along K
    # o_ref:    (1, Cout, HW)
    # acat_ref: VMEM scratch (10*Cin, HW) -- K-stacked activations for one fat matmul
    Cin = x_ref.shape[1]
    HW = x_ref.shape[2]

    x = x_ref[0].astype(jnp.float32)                    # (Cin, HW)

    # Instance-norm statistics per channel over H*W (biased variance, eps = 1e-5).
    mean = jnp.mean(x, axis=1, keepdims=True)           # (Cin, 1)
    xc = x - mean
    var = jnp.mean(xc * xc, axis=1, keepdims=True)      # (Cin, 1)
    inv = lax.rsqrt(var + EPS)                          # (Cin, 1)

    # Fused affine + ReLU: one FMA per branch (gamma folded into the rsqrt scale).
    # norm1/norm2 share statistics (same input) but have independent affine params.
    a1 = jnp.maximum(xc * (g1_ref[...] * inv) + b1_ref[...], 0.0)   # (Cin, HW)
    a2 = jnp.maximum(xc * (g2_ref[...] * inv) + b2_ref[...], 0.0)   # (Cin, HW)

    # --- Build the K-stacked activation: [a1 ; shifted/masked a2 for the 9 taps] ---------
    acat_ref[0:Cin, :] = a1                              # 1x1 branch = "tap" 0
    row = row_ref[...]                                   # (1, HW)
    col = col_ref[...]                                   # (1, HW)
    for ky in range(3):
        for kx in range(3):
            dy, dx = ky - 1, kx - 1
            s = dy * W + dx                              # flat offset of the source pixel
            # piece[:, p] = a2[:, p + s] (wrap-around); XLU lane roll, VPU/MXU slots stay free.
            piece = a2 if s == 0 else pltpu.roll(a2, shift=(-s) % HW, axis=1)
            # Zero the wrapped-around positions (conv2 uses zero padding of 1).
            m = None
            if dy == -1:
                m = row >= 1
            elif dy == 1:
                m = row <= H - 2
            if dx == -1:
                c = col >= 1
                m = c if m is None else jnp.logical_and(m, c)
            elif dx == 1:
                c = col <= W - 2
                m = c if m is None else jnp.logical_and(m, c)
            if m is not None:
                piece = jnp.where(m, piece, 0.0)
            t = ky * 3 + kx
            acat_ref[(1 + t) * Cin:(2 + t) * Cin, :] = piece

    # --- Single fat matmul: (Cout, 10*Cin) @ (10*Cin, HW) -> (Cout, HW) ------------------
    # K = 40 instead of ten K = 4 dots; the (Cout, 256) store is unmasked / lane-dense.
    # NOTE: for production channel counts, cast operands to bf16 here (keep f32 accumulate)
    # and add a row-tiled 'parallel' grid axis with a separate stats pass (v7x, 64 MiB VMEM).
    out = jnp.dot(w_ref[...], acat_ref[...], preferred_element_type=jnp.float32)
    o_ref[0] = out.astype(o_ref.dtype)


def two_conv_block_in(x_nchw, g1, b1, g2, b2, w1_pt, w2_pt):
    """x_nchw: (N, Cin, H, W). w1_pt: (Cout, Cin, 1, 1). w2_pt: (Cout, Cin, 3, 3)."""
    N, Cin, H, W = x_nchw.shape
    Cout = w1_pt.shape[0]
    HW = H * W

    # Free relayout: keep NCHW, just flatten spatial (no HBM transpose on input or output).
    x = x_nchw.reshape(N, Cin, HW)

    # K-stacked weight: columns [0:Cin] = 1x1 conv; columns [(1+t)*Cin:(2+t)*Cin] = 3x3 tap
    # with t = ky*3 + kx (matches the activation stacking order inside the kernel).
    w1 = w1_pt[:, :, 0, 0]                                         # (Cout, Cin)
    w2_taps = jnp.transpose(w2_pt, (0, 2, 3, 1)).reshape(Cout, 9, Cin)
    w_cat = jnp.concatenate([w1[:, None, :], w2_taps], axis=1).reshape(Cout, 10 * Cin)

    g1_c, b1_c = g1.reshape(Cin, 1), b1.reshape(Cin, 1)
    g2_c, b2_c = g2.reshape(Cin, 1), b2.reshape(Cin, 1)

    # Per-lane spatial coordinates, used only for the conv2 boundary masks
    # (computed in the wrapper so the kernel needs no vector integer div/mod).
    flat = jnp.arange(HW, dtype=jnp.int32)
    row_ids = (flat // W).reshape(1, HW)
    col_ids = (flat % W).reshape(1, HW)

    out_flat = pl.pallas_call(
        functools.partial(_two_conv_block_in_kernel, H=H, W=W),
        out_shape=jax.ShapeDtypeStruct((N, Cout, HW), x_nchw.dtype),
        grid_spec=pltpu.PrefetchScalarGridSpec(
            num_scalar_prefetch=0,
            grid=(N,),
            in_specs=[
                pl.BlockSpec((1, Cin, HW), lambda n: (n, 0, 0)),
                pl.BlockSpec((Cin, 1), lambda n: (0, 0)),
                pl.BlockSpec((Cin, 1), lambda n: (0, 0)),
                pl.BlockSpec((Cin, 1), lambda n: (0, 0)),
                pl.BlockSpec((Cin, 1), lambda n: (0, 0)),
                pl.BlockSpec((1, HW), lambda n: (0, 0)),
                pl.BlockSpec((1, HW), lambda n: (0, 0)),
                pl.BlockSpec((Cout, 10 * Cin), lambda n: (0, 0)),
            ],
            out_specs=pl.BlockSpec((1, Cout, HW), lambda n: (n, 0, 0)),
            scratch_shapes=[pltpu.VMEM((10 * Cin, HW), jnp.float32)],
        ),
        compiler_params=pltpu.CompilerParams(dimension_semantics=("parallel",)),
    )(x, g1_c, b1_c, g2_c, b2_c, row_ids, col_ids, w_cat)

    return out_flat.reshape(N, Cout, H, W)                          # still NCHW, free reshape


def _reference(x, g1, b1, g2, b2, w1_pt, w2_pt):
    mean = jnp.mean(x, axis=(2, 3), keepdims=True)
    var = jnp.mean((x - mean) ** 2, axis=(2, 3), keepdims=True)
    xhat = (x - mean) * lax.rsqrt(var + EPS)
    a1 = jax.nn.relu(xhat * g1[None, :, None, None] + b1[None, :, None, None])
    a2 = jax.nn.relu(xhat * g2[None, :, None, None] + b2[None, :, None, None])
    o1 = lax.conv_general_dilated(a1, w1_pt, (1, 1), 'VALID',
                                  dimension_numbers=('NCHW', 'OIHW', 'NCHW'))
    o2 = lax.conv_general_dilated(a2, w2_pt, (1, 1), ((1, 1), (1, 1)),
                                  dimension_numbers=('NCHW', 'OIHW', 'NCHW'))
    return o1 + o2


if __name__ == "__main__":
    N, Cin, Cout, H, W = 2, 4, 8, 16, 16
    key = jax.random.PRNGKey(0)
    kx, kg1, kb1, kg2, kb2, kw1, kw2 = jax.random.split(key, 7)

    x = jax.random.normal(kx, (N, Cin, H, W), dtype=jnp.float32)
    # InstanceNorm2d affine params (PyTorch default is ones/zeros -- perturb slightly).
    g1 = 1.0 + 0.1 * jax.random.normal(kg1, (Cin,), dtype=jnp.float32)
    b1 = 0.1 * jax.random.normal(kb1, (Cin,), dtype=jnp.float32)
    g2 = 1.0 + 0.1 * jax.random.normal(kg2, (Cin,), dtype=jnp.float32)
    b2 = 0.1 * jax.random.normal(kb2, (Cin,), dtype=jnp.float32)
    # Conv weights (bias=False), PyTorch OIHW shapes.
    w1_pt = 0.2 * jax.random.normal(kw1, (Cout, Cin, 1, 1), dtype=jnp.float32)
    w2_pt = 0.1 * jax.random.normal(kw2, (Cout, Cin, 3, 3), dtype=jnp.float32)

    out = two_conv_block_in(x, g1, b1, g2, b2, w1_pt, w2_pt)
    out = jax.block_until_ready(out)

    ref = _reference(x, g1, b1, g2, b2, w1_pt, w2_pt)
    assert out.shape == (N, Cout, H, W)
    err = float(jnp.max(jnp.abs(out - ref)))
    assert err < 1e-4, f"mismatch vs reference: {err}"
    print("KERNEL_OK")
</pallas_src>

<mosaic_0001>
module attributes {stable_mosaic.version = 11 : i64} {
  func.func @_two_conv_block_in_kernel(%arg0: i32, %arg1: memref<1x4x256xf32, #tpu.memory_space<vmem>>, %arg2: memref<4x1xf32, #tpu.memory_space<vmem>>, %arg3: memref<4x1xf32, #tpu.memory_space<vmem>>, %arg4: memref<4x1xf32, #tpu.memory_space<vmem>>, %arg5: memref<4x1xf32, #tpu.memory_space<vmem>>, %arg6: memref<1x256xi32, #tpu.memory_space<vmem>>, %arg7: memref<1x256xi32, #tpu.memory_space<vmem>>, %arg8: memref<8x40xf32, #tpu.memory_space<vmem>>, %arg9: memref<1x8x256xf32, #tpu.memory_space<vmem>>, %arg10: memref<40x256xf32, #tpu.memory_space<vmem>>) attributes {dimension_semantics = [#tpu.dimension_semantics<parallel>], iteration_bounds = array<i64: 2>, scalar_prefetch = 0 : i64, scratch_operands = 1 : i64, tpu.core_type = #tpu.core_type<tc>, window_params = [{transform_indices = @transform_0, window_bounds = array<i64: 1, 4, 256>}, {pipeline_mode = #tpu.pipeline_mode<synchronous>, transform_indices = @transform_1, window_bounds = array<i64: 4, 1>}, {pipeline_mode = #tpu.pipeline_mode<synchronous>, transform_indices = @transform_2, window_bounds = array<i64: 4, 1>}, {pipeline_mode = #tpu.pipeline_mode<synchronous>, transform_indices = @transform_3, window_bounds = array<i64: 4, 1>}, {pipeline_mode = #tpu.pipeline_mode<synchronous>, transform_indices = @transform_4, window_bounds = array<i64: 4, 1>}, {pipeline_mode = #tpu.pipeline_mode<synchronous>, transform_indices = @transform_5, window_bounds = array<i64: 1, 256>}, {pipeline_mode = #tpu.pipeline_mode<synchronous>, transform_indices = @transform_6, window_bounds = array<i64: 1, 256>}, {pipeline_mode = #tpu.pipeline_mode<synchronous>, transform_indices = @transform_7, window_bounds = array<i64: 8, 40>}, {transform_indices = @transform_8, window_bounds = array<i64: 1, 8, 256>}]} {
    %c0 = arith.constant 0 : index
    %c0_0 = arith.constant 0 : index
    %c0_1 = arith.constant 0 : index
    %0 = vector.load %arg1[%c0, %c0_0, %c0_1] : memref<1x4x256xf32, #tpu.memory_space<vmem>>, vector<1x4x256xf32>
    %1 = vector.shape_cast %0 : vector<1x4x256xf32> to vector<4x256xf32>
    %cst = arith.constant dense<0.000000e+00> : vector<4xf32>
    %2 = vector.multi_reduction <add>, %1, %cst [1] : vector<4x256xf32> to vector<4xf32>
    %3 = vector.shape_cast %2 : vector<4xf32> to vector<4x1xf32>
    %cst_2 = arith.constant 2.560000e+02 : f32
    %4 = vector.broadcast %cst_2 : f32 to vector<4x1xf32>
    %5 = arith.divf %3, %4 : vector<4x1xf32>
    %6 = vector.broadcast %5 : vector<4x1xf32> to vector<4x256xf32>
    %7 = arith.subf %1, %6 : vector<4x256xf32>
    %8 = arith.mulf %7, %7 : vector<4x256xf32>
    %cst_3 = arith.constant dense<0.000000e+00> : vector<4xf32>
    %9 = vector.multi_reduction <add>, %8, %cst_3 [1] : vector<4x256xf32> to vector<4xf32>
    %10 = vector.shape_cast %9 : vector<4xf32> to vector<4x1xf32>
    %cst_4 = arith.constant 2.560000e+02 : f32
    %11 = vector.broadcast %cst_4 : f32 to vector<4x1xf32>
    %12 = arith.divf %10, %11 : vector<4x1xf32>
    %cst_5 = arith.constant 9.99999974E-6 : f32
    %13 = vector.broadcast %cst_5 : f32 to vector<4x1xf32>
    %14 = arith.addf %12, %13 : vector<4x1xf32>
    %15 = math.rsqrt %14 : vector<4x1xf32>
    %c0_6 = arith.constant 0 : index
    %c0_7 = arith.constant 0 : index
    %16 = vector.load %arg2[%c0_6, %c0_7] : memref<4x1xf32, #tpu.memory_space<vmem>>, vector<4x1xf32>
    %17 = arith.mulf %16, %15 : vector<4x1xf32>
    %18 = vector.broadcast %17 : vector<4x1xf32> to vector<4x256xf32>
    %19 = arith.mulf %7, %18 : vector<4x256xf32>
    %c0_8 = arith.constant 0 : index
    %c0_9 = arith.constant 0 : index
    %20 = vector.load %arg3[%c0_8, %c0_9] : memref<4x1xf32, #tpu.memory_space<vmem>>, vector<4x1xf32>
    %21 = vector.broadcast %20 : vector<4x1xf32> to vector<4x256xf32>
    %22 = arith.addf %19, %21 : vector<4x256xf32>
    %cst_10 = arith.constant 0.000000e+00 : f32
    %23 = vector.broadcast %cst_10 : f32 to vector<4x256xf32>
    %24 = arith.maximumf %22, %23 : vector<4x256xf32>
    %c0_11 = arith.constant 0 : index
    %c0_12 = arith.constant 0 : index
    %25 = vector.load %arg4[%c0_11, %c0_12] : memref<4x1xf32, #tpu.memory_space<vmem>>, vector<4x1xf32>
    %26 = arith.mulf %25, %15 : vector<4x1xf32>
    %27 = vector.broadcast %26 : vector<4x1xf32> to vector<4x256xf32>
    %28 = arith.mulf %7, %27 : vector<4x256xf32>
    %c0_13 = arith.constant 0 : index
    %c0_14 = arith.constant 0 : index
    %29 = vector.load %arg5[%c0_13, %c0_14] : memref<4x1xf32, #tpu.memory_space<vmem>>, vector<4x1xf32>
    %30 = vector.broadcast %29 : vector<4x1xf32> to vector<4x256xf32>
    %31 = arith.addf %28, %30 : vector<4x256xf32>
    %cst_15 = arith.constant 0.000000e+00 : f32
    %32 = vector.broadcast %cst_15 : f32 to vector<4x256xf32>
    %33 = arith.maximumf %31, %32 : vector<4x256xf32>
    %c0_16 = arith.constant 0 : index
    %c0_17 = arith.constant 0 : index
    %34 = vector.load %arg10[%c0_16, %c0_17] : memref<40x256xf32, #tpu.memory_space<vmem>>, vector<4x256xf32>
    tpu.vector_store %arg10[%c0_16, %c0_17], %24 {strides = array<i32>} : memref<40x256xf32, #tpu.memory_space<vmem>>, vector<4x256xf32>,
    %c0_18 = arith.constant 0 : index
    %c0_19 = arith.constant 0 : index
    %35 = vector.load %arg6[%c0_18, %c0_19] : memref<1x256xi32, #tpu.memory_space<vmem>>, vector<1x256xi32>
    %c0_20 = arith.constant 0 : index
    %c0_21 = arith.constant 0 : index
    %36 = vector.load %arg7[%c0_20, %c0_21] : memref<1x256xi32, #tpu.memory_space<vmem>>, vector<1x256xi32>
    %c17_i32 = arith.constant 17 : i32
    %37 = tpu.dynamic_rotate %33 by %c17_i32 dim 1 : vector<4x256xf32>, i32 -> vector<4x256xf32>
    %c1_i32 = arith.constant 1 : i32
    %38 = vector.broadcast %c1_i32 : i32 to vector<1x256xi32>
    %39 = arith.cmpi sge, %35, %38 : vector<1x256xi32>
    %c1_i32_22 = arith.constant 1 : i32
    %40 = vector.broadcast %c1_i32_22 : i32 to vector<1x256xi32>
    %41 = arith.cmpi sge, %36, %40 : vector<1x256xi32>
    %42 = arith.andi %39, %41 : vector<1x256xi1>
    %cst_23 = arith.constant 0.000000e+00 : f32
    %43 = vector.shape_cast %42 : vector<1x256xi1> to vector<1x256xi1>
    %44 = vector.broadcast %43 : vector<1x256xi1> to vector<4x256xi1>
    %45 = vector.broadcast %cst_23 : f32 to vector<4x256xf32>
    %46 = arith.select %44, %37, %45 : vector<4x256xi1>, vector<4x256xf32>
    %c4 = arith.constant 4 : index
    %c0_24 = arith.constant 0 : index
    %47 = vector.load %arg10[%c4, %c0_24] : memref<40x256xf32, #tpu.memory_space<vmem>>, vector<4x256xf32>
    tpu.vector_store %arg10[%c4, %c0_24], %46 {strides = array<i32>} : memref<40x256xf32, #tpu.memory_space<vmem>>, vector<4x256xf32>,
    %c16_i32 = arith.constant 16 : i32
    %48 = tpu.dynamic_rotate %33 by %c16_i32 dim 1 : vector<4x256xf32>, i32 -> vector<4x256xf32>
    %c1_i32_25 = arith.constant 1 : i32
    %49 = vector.broadcast %c1_i32_25 : i32 to vector<1x256xi32>
    %50 = arith.cmpi sge, %35, %49 : vector<1x256xi32>
    %cst_26 = arith.constant 0.000000e+00 : f32
    %51 = vector.shape_cast %50 : vector<1x256xi1> to vector<1x256xi1>
    %52 = vector.broadcast %51 : vector<1x256xi1> to vector<4x256xi1>
    %53 = vector.broadcast %cst_26 : f32 to vector<4x256xf32>
    %54 = arith.select %52, %48, %53 : vector<4x256xi1>, vector<4x256xf32>
    %c8 = arith.constant 8 : index
    %c0_27 = arith.constant 0 : index
    %55 = vector.load %arg10[%c8, %c0_27] : memref<40x256xf32, #tpu.memory_space<vmem>>, vector<4x256xf32>
    tpu.vector_store %arg10[%c8, %c0_27], %54 {strides = array<i32>} : memref<40x256xf32, #tpu.memory_space<vmem>>, vector<4x256xf32>,
    %c15_i32 = arith.constant 15 : i32
    %56 = tpu.dynamic_rotate %33 by %c15_i32 dim 1 : vector<4x256xf32>, i32 -> vector<4x256xf32>
    %c1_i32_28 = arith.constant 1 : i32
    %57 = vector.broadcast %c1_i32_28 : i32 to vector<1x256xi32>
    %58 = arith.cmpi sge, %35, %57 : vector<1x256xi32>
    %c14_i32 = arith.constant 14 : i32
    %59 = vector.broadcast %c14_i32 : i32 to vector<1x256xi32>
    %60 = arith.cmpi sle, %36, %59 : vector<1x256xi32>
    %61 = arith.andi %58, %60 : vector<1x256xi1>
    %cst_29 = arith.constant 0.000000e+00 : f32
    %62 = vector.shape_cast %61 : vector<1x256xi1> to vector<1x256xi1>
    %63 = vector.broadcast %62 : vector<1x256xi1> to vector<4x256xi1>
    %64 = vector.broadcast %cst_29 : f32 to vector<4x256xf32>
    %65 = arith.select %63, %56, %64 : vector<4x256xi1>, vector<4x256xf32>
    %c12 = arith.constant 12 : index
    %c0_30 = arith.constant 0 : index
    %66 = vector.load %arg10[%c12, %c0_30] : memref<40x256xf32, #tpu.memory_space<vmem>>, vector<4x256xf32>
    tpu.vector_store %arg10[%c12, %c0_30], %65 {strides = array<i32>} : memref<40x256xf32, #tpu.memory_space<vmem>>, vector<4x256xf32>,
    %c1_i32_31 = arith.constant 1 : i32
    %67 = tpu.dynamic_rotate %33 by %c1_i32_31 dim 1 : vector<4x256xf32>, i32 -> vector<4x256xf32>
    %c1_i32_32 = arith.constant 1 : i32
    %68 = vector.broadcast %c1_i32_32 : i32 to vector<1x256xi32>
    %69 = arith.cmpi sge, %36, %68 : vector<1x256xi32>
    %cst_33 = arith.constant 0.000000e+00 : f32
    %70 = vector.shape_cast %69 : vector<1x256xi1> to vector<1x256xi1>
    %71 = vector.broadcast %70 : vector<1x256xi1> to vector<4x256xi1>
    %72 = vector.broadcast %cst_33 : f32 to vector<4x256xf32>
    %73 = arith.select %71, %67, %72 : vector<4x256xi1>, vector<4x256xf32>
    %c16 = arith.constant 16 : index
    %c0_34 = arith.constant 0 : index
    %74 = vector.load %arg10[%c16, %c0_34] : memref<40x256xf32, #tpu.memory_space<vmem>>, vector<4x256xf32>
    tpu.vector_store %arg10[%c16, %c0_34], %73 {strides = array<i32>} : memref<40x256xf32, #tpu.memory_space<vmem>>, vector<4x256xf32>,
    %c20 = arith.constant 20 : index
    %c0_35 = arith.constant 0 : index
    %75 = vector.load %arg10[%c20, %c0_35] : memref<40x256xf32, #tpu.memory_space<vmem>>, vector<4x256xf32>
    tpu.vector_store %arg10[%c20, %c0_35], %33 {strides = array<i32>} : memref<40x256xf32, #tpu.memory_space<vmem>>, vector<4x256xf32>,
    %c255_i32 = arith.constant 255 : i32
    %76 = tpu.dynamic_rotate %33 by %c255_i32 dim 1 : vector<4x256xf32>, i32 -> vector<4x256xf32>
    %c14_i32_36 = arith.constant 14 : i32
    %77 = vector.broadcast %c14_i32_36 : i32 to vector<1x256xi32>
    %78 = arith.cmpi sle, %36, %77 : vector<1x256xi32>
    %cst_37 = arith.constant 0.000000e+00 : f32
    %79 = vector.shape_cast %78 : vector<1x256xi1> to vector<1x256xi1>
    %80 = vector.broadcast %79 : vector<1x256xi1> to vector<4x256xi1>
    %81 = vector.broadcast %cst_37 : f32 to vector<4x256xf32>
    %82 = arith.select %80, %76, %81 : vector<4x256xi1>, vector<4x256xf32>
    %c24 = arith.constant 24 : index
    %c0_38 = arith.constant 0 : index
    %83 = vector.load %arg10[%c24, %c0_38] : memref<40x256xf32, #tpu.memory_space<vmem>>, vector<4x256xf32>
    tpu.vector_store %arg10[%c24, %c0_38], %82 {strides = array<i32>} : memref<40x256xf32, #tpu.memory_space<vmem>>, vector<4x256xf32>,
    %c241_i32 = arith.constant 241 : i32
    %84 = tpu.dynamic_rotate %33 by %c241_i32 dim 1 : vector<4x256xf32>, i32 -> vector<4x256xf32>
    %c14_i32_39 = arith.constant 14 : i32
    %85 = vector.broadcast %c14_i32_39 : i32 to vector<1x256xi32>
    %86 = arith.cmpi sle, %35, %85 : vector<1x256xi32>
    %c1_i32_40 = arith.constant 1 : i32
    %87 = vector.broadcast %c1_i32_40 : i32 to vector<1x256xi32>
    %88 = arith.cmpi sge, %36, %87 : vector<1x256xi32>
    %89 = arith.andi %86, %88 : vector<1x256xi1>
    %cst_41 = arith.constant 0.000000e+00 : f32
    %90 = vector.shape_cast %89 : vector<1x256xi1> to vector<1x256xi1>
    %91 = vector.broadcast %90 : vector<1x256xi1> to vector<4x256xi1>
    %92 = vector.broadcast %cst_41 : f32 to vector<4x256xf32>
    %93 = arith.select %91, %84, %92 : vector<4x256xi1>, vector<4x256xf32>
    %c28 = arith.constant 28 : index
    %c0_42 = arith.constant 0 : index
    %94 = vector.load %arg10[%c28, %c0_42] : memref<40x256xf32, #tpu.memory_space<vmem>>, vector<4x256xf32>
    tpu.vector_store %arg10[%c28, %c0_42], %93 {strides = array<i32>} : memref<40x256xf32, #tpu.memory_space<vmem>>, vector<4x256xf32>,
    %c240_i32 = arith.constant 240 : i32
    %95 = tpu.dynamic_rotate %33 by %c240_i32 dim 1 : vector<4x256xf32>, i32 -> vector<4x256xf32>
    %c14_i32_43 = arith.constant 14 : i32
    %96 = vector.broadcast %c14_i32_43 : i32 to vector<1x256xi32>
    %97 = arith.cmpi sle, %35, %96 : vector<1x256xi32>
    %cst_44 = arith.constant 0.000000e+00 : f32
    %98 = vector.shape_cast %97 : vector<1x256xi1> to vector<1x256xi1>
    %99 = vector.broadcast %98 : vector<1x256xi1> to vector<4x256xi1>
    %100 = vector.broadcast %cst_44 : f32 to vector<4x256xf32>
    %101 = arith.select %99, %95, %100 : vector<4x256xi1>, vector<4x256xf32>
    %c32 = arith.constant 32 : index
    %c0_45 = arith.constant 0 : index
    %102 = vector.load %arg10[%c32, %c0_45] : memref<40x256xf32, #tpu.memory_space<vmem>>, vector<4x256xf32>
    tpu.vector_store %arg10[%c32, %c0_45], %101 {strides = array<i32>} : memref<40x256xf32, #tpu.memory_space<vmem>>, vector<4x256xf32>,
    %c239_i32 = arith.constant 239 : i32
    %103 = tpu.dynamic_rotate %33 by %c239_i32 dim 1 : vector<4x256xf32>, i32 -> vector<4x256xf32>
    %c14_i32_46 = arith.constant 14 : i32
    %104 = vector.broadcast %c14_i32_46 : i32 to vector<1x256xi32>
    %105 = arith.cmpi sle, %35, %104 : vector<1x256xi32>
    %c14_i32_47 = arith.constant 14 : i32
    %106 = vector.broadcast %c14_i32_47 : i32 to vector<1x256xi32>
    %107 = arith.cmpi sle, %36, %106 : vector<1x256xi32>
    %108 = arith.andi %105, %107 : vector<1x256xi1>
    %cst_48 = arith.constant 0.000000e+00 : f32
    %109 = vector.shape_cast %108 : vector<1x256xi1> to vector<1x256xi1>
    %110 = vector.broadcast %109 : vector<1x256xi1> to vector<4x256xi1>
    %111 = vector.broadcast %cst_48 : f32 to vector<4x256xf32>
    %112 = arith.select %110, %103, %111 : vector<4x256xi1>, vector<4x256xf32>
    %c36 = arith.constant 36 : index
    %c0_49 = arith.constant 0 : index
    %113 = vector.load %arg10[%c36, %c0_49] : memref<40x256xf32, #tpu.memory_space<vmem>>, vector<4x256xf32>
    tpu.vector_store %arg10[%c36, %c0_49], %112 {strides = array<i32>} : memref<40x256xf32, #tpu.memory_space<vmem>>, vector<4x256xf32>,
    %c0_50 = arith.constant 0 : index
    %c0_51 = arith.constant 0 : index
    %114 = vector.load %arg8[%c0_50, %c0_51] : memref<8x40xf32, #tpu.memory_space<vmem>>, vector<8x40xf32>
    %c0_52 = arith.constant 0 : index
    %c0_53 = arith.constant 0 : index
    %115 = vector.load %arg10[%c0_52, %c0_53] : memref<40x256xf32, #tpu.memory_space<vmem>>, vector<40x256xf32>
    %cst_54 = arith.constant dense<0.000000e+00> : vector<8x256xf32>
    %116 = tpu.matmul %114, %115, %cst_54 {dimension_numbers = #tpu.dot_dimension_numbers<[1], [0], [0], [1], [0, 0, 1, 1], [], []>} : vector<8x40xf32>, vector<40x256xf32>, vector<8x256xf32> -> vector<8x256xf32>
    %c0_55 = arith.constant 0 : index
    %c0_56 = arith.constant 0 : index
    %c0_57 = arith.constant 0 : index
    %117 = vector.load %arg9[%c0_55, %c0_56, %c0_57] : memref<1x8x256xf32, #tpu.memory_space<vmem>>, vector<1x8x256xf32>
    %118 = vector.shape_cast %117 : vector<1x8x256xf32> to vector<8x256xf32>
    %119 = vector.shape_cast %116 : vector<8x256xf32> to vector<1x8x256xf32>
    tpu.vector_store %arg9[%c0_55, %c0_56, %c0_57], %119 {strides = array<i32>} : memref<1x8x256xf32, #tpu.memory_space<vmem>>, vector<1x8x256xf32>,
    return
  }
  func.func @transform_0(%arg0: i32) -> (i32, i32, i32) {
    %c0_i32 = arith.constant 0 : i32
    %c0_i32_0 = arith.constant 0 : i32
    %c0_i32_1 = arith.constant 0 : i32
    return %arg0, %c0_i32, %c0_i32_0 : i32, i32, i32
  }
  func.func @transform_1(%arg0: i32) -> (i32, i32) {
    %c0_i32 = arith.constant 0 : i32
    %c0_i32_0 = arith.constant 0 : i32
    %c0_i32_1 = arith.constant 0 : i32
    return %c0_i32, %c0_i32_0 : i32, i32
  }
  func.func @transform_2(%arg0: i32) -> (i32, i32) {
    %c0_i32 = arith.constant 0 : i32
    %c0_i32_0 = arith.constant 0 : i32
    %c0_i32_1 = arith.constant 0 : i32
    return %c0_i32, %c0_i32_0 : i32, i32
  }
  func.func @transform_3(%arg0: i32) -> (i32, i32) {
    %c0_i32 = arith.constant 0 : i32
    %c0_i32_0 = arith.constant 0 : i32
    %c0_i32_1 = arith.constant 0 : i32
    return %c0_i32, %c0_i32_0 : i32, i32
  }
  func.func @transform_4(%arg0: i32) -> (i32, i32) {
    %c0_i32 = arith.constant 0 : i32
    %c0_i32_0 = arith.constant 0 : i32
    %c0_i32_1 = arith.constant 0 : i32
    return %c0_i32, %c0_i32_0 : i32, i32
  }
  func.func @transform_5(%arg0: i32) -> (i32, i32) {
    %c0_i32 = arith.constant 0 : i32
    %c0_i32_0 = arith.constant 0 : i32
    %c0_i32_1 = arith.constant 0 : i32
    return %c0_i32, %c0_i32_0 : i32, i32
  }
  func.func @transform_6(%arg0: i32) -> (i32, i32) {
    %c0_i32 = arith.constant 0 : i32
    %c0_i32_0 = arith.constant 0 : i32
    %c0_i32_1 = arith.constant 0 : i32
    return %c0_i32, %c0_i32_0 : i32, i32
  }
  func.func @transform_7(%arg0: i32) -> (i32, i32) {
    %c0_i32 = arith.constant 0 : i32
    %c0_i32_0 = arith.constant 0 : i32
    %c0_i32_1 = arith.constant 0 : i32
    return %c0_i32, %c0_i32_0 : i32, i32
  }
  func.func @transform_8(%arg0: i32) -> (i32, i32, i32) {
    %c0_i32 = arith.constant 0 : i32
    %c0_i32_0 = arith.constant 0 : i32
    %c0_i32_1 = arith.constant 0 : i32
    return %arg0, %c0_i32, %c0_i32_0 : i32, i32, i32
  }
}

</mosaic_0001>

<bundles_post_ra>
// kernel: tpu_custom_call.1
= control target key start
LH: loop header
LB: loop body
LE: loop exit
PB: predicated region body
PF: predicated region fallthrough
CT: control target
= control target key end

     0   :  { %13 = vsyncpa [#allocation4], 0  ;;  %s1218_s0 = inlined_call_operand.vmem [shape: f32[2,4,256], index: 0, kind: input, shape index: {}]   ;;  %s1219_s1 = inlined_call_operand.vmem [shape: f32[4,1], index: 1, kind: input, shape index: {}]   ;;  %s1220_s2 = inlined_call_operand.vmem [shape: f32[4,1], index: 2, kind: input, shape index: {}]   ;;  %s1221_s3 = inlined_call_operand.vmem [shape: f32[4,1], index: 3, kind: input, shape index: {}]   ;;  %s1222_s4 = inlined_call_operand.vmem [shape: f32[4,1], index: 4, kind: input, shape index: {}]   ;;  %s1223_s5 = inlined_call_operand.vmem [shape: s32[1,256], index: 5, kind: input, shape index: {}]   ;;  %s1224_s6 = inlined_call_operand.vmem [shape: s32[1,256], index: 6, kind: input, shape index: {}]   ;;  %s1225_s7 = inlined_call_operand.vmem [shape: f32[8,40], index: 7, kind: input, shape index: {}]   ;;  %s1226_s8 = inlined_call_operand.hbm [shape: f32[2,8,256], index: 8, kind: output, shape index: {}]  }
   0x1   :  { %15 = vsyncpa [#allocation4 + $0x1], 0  ;;  %s973_s27 = smov 0   ;;  %s975_s28 = smov 0  }
   0x2   :  { %s977_s29 = smov 0   ;;  %s979_s30 = smov 0  }
   0x3 LB: > { %s994_s9 = sadd.s32 4294967295, %s914_s30   ;;  %s784_s10 = sadd.s32 4294967294, %s914_s30   ;;  %s914_s30 = sphi %s979_s30, %s1244_s30   ;;  %s910_s29 = sphi %s977_s29, %s1243_s29   ;;  %s906_s28 = sphi %s975_s28, %s1242_s28   ;;  %s902_s27 = sphi %s973_s27, %s1241_s27  }
   0x4   : > { %s998_s11 = sadd.s32 1, %s914_s30   ;;  %s201_s12 = sadd.s32 1, %s910_s29 }
   0x5   : > { %s198_s13 = ssub.s32 %s914_s30, %s998_s11  ;;  %p211_p0 = scmp.ne.s32.totalorder %s910_s29, %s906_s28 }
   0x6   : > { %p199_p1 = scmp.eq.s32.totalorder %s198_s13, 0  ;;  %p212_p2 = scmp.eq.s32.totalorder %s994_s9, 1 }
   0x7   : > { %p217_p3 = scmp.ne.s32.totalorder %s906_s28, %s902_s27  ;;  %p218_p4 = scmp.eq.s32.totalorder %s784_s10, 1 }
   0x8   : > { %s1009_s14 = scalar_select %p199_p1, %s910_s29, %s201_s12  }
   0x9   : > { %p1011_p5 = por %p212_p2, %p211_p0  ;;  %p1015_p6 = por %p218_p4, %p217_p3 }
   0xa   : > { %p787_p7 = scmp.ge.s32.totalorder %s914_s30, 1  ;;  %p265_p8 = scmp.lt.s32.totalorder %s914_s30, 3 }
   0xc   : > { %p266_p9 = pnand %p787_p7, %p265_p8 }
   0xd   : > { %p299_p10 = scmp.lt.s32.totalorder (!%p266_p9), %s994_s9, 1  ;;  %s920_s19 = smov (!%p266_p9), 113  }
   0xe   : > { %269 = sbr.rel (%p266_p9) target bundleno = 857 (0x359), region = 52  ;;  %s921_s20 = smov (!%p266_p9), 17  }
   0xf   : > { %s923_s22 = smov (!%p266_p9), 16   ;;  %s924_s23 = smov (!%p266_p9), 127  }
  0x10   : > { %s925_s24 = smov (!%p266_p9), 15  }
  0x13   : > { %s300_s17 = scalar_select %p299_p10, %s994_s9, 1  ;;  %vm308_vm0 = vcmask 1043456   ;;  %v916_v5 = vmov 839922192   ;;  %v320_v7 = vlaneseq  ;;  %v917_v20 = vmov 0  }
  0x14   : > { %v318_v6 = vunpack.c.l.s4 %v916_v5  ;;  %850 = vset.pattern.permute.xlu0 %v917_v20  ;;  %849 = vset.pattern.permute.xlu1 %v917_v20  ;;  %v368_v24 = vld [vmem:[%s1221_s3] sm:$0xf]  ;;  %v926_v48 = vmov 0.0  }
  0x15   : > { %s797_s18 = sshll.u32 %s300_s17, 3  ;;  %v1029_v9 = vshrl.u32 %v320_v7, 7  ;;  %v338_v25 = vld [vmem:[%s1219_s1] sm:$0xf]  ;;  %s918_s17 = smov 111   ;;  %701 = vmatprep.mubr.f32.mxu0 %v926_v48  ;;  %v1077_v58 = vand.u32 127, %v320_v7 }
  0x16   : > { %s303_s21 = scalar_lea.vmem %s1218_s0, %s797_s18  ;;  %v319_v8 = vunpack.c.0.s8 %v318_v6  ;;  %v383_v29 = vld [vmem:[%s1222_s4] sm:$0xf]  ;;  %s919_s18 = smov 1  }
  0x17   : > { %v304_v0 = vld [vmem:[%s303_s21] sm:$0xff]  ;;  %s922_s21 = smov 112   ;;  %v1066_v54 = vsub.s32 0, %v1029_v9  ;;  %v1069_v55 = vsub.s32 1, %v1029_v9  ;;  %vm597_vm6 = vcmp.lt.s32.totalorder %v1077_v58, 111  ;;  %vm545_vm9 = vcmp.lt.s32.totalorder %v1077_v58, 113 }
  0x18   : > { %v306_v1 = vcombine.high %v304_v0, %v304_v0  ;;  %v309_v2 = vsel %vm308_vm0, %v304_v0, 0.0  ;;  %v322_v10 = vsub.s32 %v319_v8, %v1029_v9  ;;  %v353_v30 = vld [vmem:[%s1220_s2] sm:$0xf]  ;;  %vm575_vm13 = vcmp.lt.s32.totalorder %v1077_v58, 112 }
  0x19   : > { %v1051_v50 = vld [vmem:[%s1223_s5] sm:$0x3] }
  0x1a   : > { %v310_v3 = vsel %vm308_vm0, %v306_v1, 0.0  ;;  %v1056_v51 = vld [vmem:[%s1224_s6] sm:$0x3]  ;;  %vm548_vm2 = vcmp.le.s32.totalorder %v1051_v50, 14  ;;  %vm417_vm12 = vcmp.ge.s32.totalorder %v1051_v50, 1 }
  0x1b   : > { %v311_v4 = vadd.f32 %v310_v3, %v309_v2  ;;  %vm470_vm1 = vcmp.le.s32.totalorder %v1056_v51, 14  ;;  %vm418_vm3 = vcmp.ge.s32.totalorder %v1056_v51, 1  ;;  %v578_v1 = vsel %vm548_vm2, 1, %v917_v20 }
  0x1c   : > { %vm600_vm4 = vmand %vm548_vm2, %vm470_vm1  ;;  %v582_v9 = vrot.slane %v578_v1, %v1066_v54 }
  0x1d   : > { %312 = vadd.xlane.f32.xlu0 %v311_v4  ;;  %vm549_vm5 = vmand %vm548_vm2, %vm418_vm3  ;;  %v601_v57 = vsel %vm600_vm4, 1, %v917_v20 }
  0x1e   : > { %v550_v59 = vsel %vm549_vm5, 1, %v917_v20  ;;  %v605_v60 = vrot.slane %v601_v57, %v1066_v54  ;;  %v609_v61 = vrot.slane %v601_v57, %v1069_v55  ;;  %vm471_vm14 = vmand %vm417_vm12, %vm470_vm1  ;;  %vm1118_vm15 = vcmp.eq.s32.totalorder %v582_v9, 1 }
  0x1f   : > { %v554_v63 = vrot.slane %v550_v59, %v1066_v54  ;;  %vm467_vm5 = vcmp.lt.s32.totalorder %v1077_v58, 15 }
  0x20   : > { %vm610_vm7 = vcmp.eq.s32.totalorder %v605_v60, 1  ;;  %vm611_vm8 = vcmp.eq.s32.totalorder %v609_v61, 1 }
  0x21   : > { %vm1091_vm10 = vcmp.eq.s32.totalorder %v554_v63, 1 }
  0xa6   : > { %v313_v11 = vpop.xlane.xlu0 %312 }
  0xa7   : > { %v315_v12 = vmul.f32 0.00390625, %v313_v11 }
  0xa9   : > { %v323_v13 = vrot.slane %v315_v12, %v322_v10  ;;  %v586_v12 = vrot.slane %v578_v1, %v1069_v55 }
  0xab   : > { %v325_v14 = vsub.f32 %v304_v0, %v323_v13  ;;  %v558_v0 = vrot.slane %v550_v59, %v1069_v55  ;;  %v526_v13 = vsel %vm470_vm1, 1, %v917_v20  ;;  %vm523_vm1 = vcmp.lt.s32.totalorder %v1077_v58, 127 }
  0xad   : > { %v326_v15 = vmul.f32 %v325_v14, %v325_v14  ;;  %vm1095_vm11 = vcmp.eq.s32.totalorder %v558_v0, 1 }
  0xaf   : > { %v328_v16 = vcombine.high %v326_v15, %v326_v15  ;;  %v330_v17 = vsel %vm308_vm0, %v326_v15, 0.0 }
  0xb1   : > { %v331_v18 = vsel %vm308_vm0, %v328_v16, 0.0  ;;  %vm588_vm0 = vcmp.eq.s32.totalorder %v586_v12, 1 }
  0xb2   : > { %v332_v19 = vadd.f32 %v331_v18, %v330_v17 }
  0xb4   : > { %333 = vadd.xlane.f32.xlu0 %v332_v19 }
 0x13d   : > { %v334_v21 = vpop.xlane.xlu0 %333 }
 0x13e   : > { %v335_v22 = vmul.f32 0.00390625, %v334_v21  ;;  %v530_v21 = vrot.slane %v526_v13, %v1066_v54 }
 0x140   : > { %v336_v23 = vadd.f32 1e-05, %v335_v22  ;;  %vm1128_vm2 = vcmp.eq.s32.totalorder %v530_v21, 1 }
 0x142   : > { %852 = vrsqrt.f32 %v336_v23 }
 0x14f   : > { %v853_v26 = vpop.eup %852 }
 0x150   : > { %v369_v27 = vmul.f32 %v853_v26, %v368_v24  ;;  %v339_v28 = vmul.f32 %v853_v26, %v338_v25  ;;  %v534_v24 = vrot.slane %v526_v13, %v1069_v55  ;;  %v472_v26 = vsel %vm471_vm14, 1, %v917_v20 }
 0x151   : > { %vm445_vm14 = vcmp.lt.s32.totalorder %v1077_v58, 16 }
 0x152   : > { %372 = vperm.xlu1 %849, %v369_v27   ;;  %342 = vperm.xlu0 %850, %v339_v28   ;;  %vm536_vm4 = vcmp.eq.s32.totalorder %v534_v24, 1 }
 0x156   : > { %386 = vperm.xlu1 %849, %v383_v29  }
 0x15a   : > { %356 = vperm.xlu1 %849, %v353_v30  }
 0x1cd   : > { %v373_v31 = vpop.permute.xlu1 %372  ;;  %v343_v33 = vpop.permute.xlu0 %342 }
 0x1ce   : > { %v380_v32 = vrot.slane %v373_v31, %v322_v10  ;;  %v350_v36 = vrot.slane %v343_v33, %v322_v10  ;;  %v480_v33 = vrot.slane %v472_v26, %v1069_v55 }
 0x1d0   : > { %v382_v35 = vmul.f32 %v380_v32, %v325_v14  ;;  %v352_v40 = vmul.f32 %v350_v36, %v325_v14  ;;  %v476_v32 = vrot.slane %v472_v26, %v1066_v54 }
 0x1d1   : > { %v387_v34 = vpop.permute.xlu1 %386 }
 0x1d2   : > { %v394_v37 = vrot.slane %v387_v34, %v322_v10  ;;  %v500_v34 = vsel %vm418_vm3, 1, %v917_v20 }
 0x1d4   : > { %v396_v38 = vadd.f32 %v394_v37, %v382_v35 }
 0x1d5   : > { %v357_v39 = vpop.permute.xlu1 %356 }
 0x1d6   : > { %v397_v41 = vmax.f32 %v396_v38, 0.0  ;;  %v364_v42 = vrot.slane %v357_v39, %v322_v10 }
 0x1d8   : > { %518 = vst [vmem:[#allocation2 + $0x28] sm:$0xf0] %v397_v41  ;;  %v366_v43 = vadd.f32 %v364_v42, %v352_v40  ;;  %593 = vrot.lane.b32.xlu1 %v397_v41, %s918_s17  ;;  %493 = vrot.lane.b32.xlu0 %v397_v41, %s919_s18  ;;  %v515_v44 = vcombine.low %v397_v41, %v397_v41 }
 0x1d9   : > { %v406_v47 = vcombine.high %v397_v41, %v397_v41  ;;  %v504_v40 = vrot.slane %v500_v34, %v1066_v54 }
 0x1da   : > { %v367_v45 = vmax.f32 %v366_v43, 0.0  ;;  %517 = vst [vmem:[#allocation2 + $0x48] sm:$0xf0] %v515_v44 }
 0x1dc   : > { %v399_v46 = vcombine.high %v367_v45, %v367_v45  ;;  %401 = vst [vmem:[#allocation2 + $0x30] sm:$0xf] %v367_v45  ;;  %541 = vrot.lane.b32.xlu1 %v397_v41, %s920_s19  ;;  %408 = vrot.lane.b32.xlu0 %v397_v41, %s921_s20 }
 0x1de   : > { %402 = vst [vmem:[#allocation2] sm:$0xf] %v399_v46 }
 0x1e0   : > { %571 = vrot.lane.b32.xlu1 %v397_v41, %s922_s21  ;;  %441 = vrot.lane.b32.xlu0 %v397_v41, %s923_s22 }
 0x1e4   : > { %519 = vrot.lane.b32.xlu1 %v397_v41, %s924_s23 }
 0x1e8   : > { %463 = vrot.lane.b32.xlu1 %v397_v41, %s925_s24  ;;  %v508_v41 = vrot.slane %v500_v34, %v1069_v55 }
 0x1ec   : > { %595 = vrot.lane.b32.xlu1 %v406_v47, %s918_s17 }
 0x1f0   : > { %543 = vrot.lane.b32.xlu1 %v406_v47, %s920_s19 }
 0x1f4   : > { %573 = vrot.lane.b32.xlu1 %v406_v47, %s922_s21 }
 0x1f8   : > { %521 = vrot.lane.b32.xlu1 %v406_v47, %s924_s23 }
 0x1fc   : > { %465 = vrot.lane.b32.xlu1 %v406_v47, %s925_s24 }
 0x200   : > { %495 = vrot.lane.b32.xlu1 %v406_v47, %s919_s18  ;;  %s296_s18 = sand.u32 1, %s906_s28  }
 0x201   : > { %s788_s19 = sshll.u32 %s296_s18, 4  ;;  %s711_s26 = scalar_lea.sflag [#allocation4], %s296_s18 }
 0x204   : > { %410 = vrot.lane.b32.xlu1 %v406_v47, %s921_s20  ;;  %s298_s20 = scalar_lea.vmem [#allocation3], %s788_s19 }
 0x205   : > { %s725_s21 = sshll.u32 %s298_s20, 4  ;;  %s1180_s21 = int_to_ptr.vmem [resolvable:$true] %s725_s21 }
 0x206   : > { %s854_s10 = scalar_lea.vmem %s1180_s21, 256 }
 0x207   : > { %p855_p11 = scmp.ne.s32.totalorder %s1180_s21, %s854_s10 }
 0x208   : > { %443 = vrot.lane.b32.xlu1 %v406_v47, %s923_s22  ;;  %s798_s22 = sshll.u32 %s994_s9, 8  ;;  %s927_s9 = smov [#allocation3]  }
 0x209   : > { %s723_s25 = scalar_lea.hbm %s1226_s8, %s798_s22  ;;  %p856_p12 = pnand %p855_p11, %p1011_p5 }
 0x20a   : > { %s858_s12 = sshll.u32 %s927_s9, 4  ;;  %s859_s12 = int_to_ptr.vmem [resolvable:$false] %s858_s12 }
 0x20b   : > { %p857_p13 = pneg %p856_p12  ;;  %s860_s13 = scalar_lea.vmem %s859_s12, 512 }
 0x20c   : > { %p861_p0 = scmp.lt.s32.totalorder %s1180_s21, %s859_s12  ;;  %p862_p1 = scmp.lt.s32.totalorder %s860_s13, %s854_s10 }
 0x20e   : > { %p863_p2 = por %p862_p1, %p861_p0 }
 0x210   : > { %p864_p3 = pnand %p863_p2, %p857_p13 }
 0x24a   : > { %v594_v49 = vpop.permute.xlu1 %593  ;;  %v494_v42 = vpop.permute.xlu0 %493 }
 0x24e   : > { %v542_v52 = vpop.permute.xlu1 %541  ;;  %v409_v1 = vpop.permute.xlu0 %408 }
 0x252   : > { %v572_v53 = vpop.permute.xlu1 %571  ;;  %v442_v13 = vpop.permute.xlu0 %441 }
 0x256   : > { %v520_v56 = vpop.permute.xlu1 %519 }
 0x25a   : > { %v1082_v62 = vpop.permute.xlu1 %463 }
 0x25e   : > { %v596_v2 = vpop.permute.xlu1 %595 }
 0x25f   : > { %v598_v3 = vsel %vm597_vm6, %v594_v49, %v596_v2  ;;  %v599_v4 = vsel %vm597_vm6, %v596_v2, %v594_v49  ;;  %vm419_vm6 = vmand %vm417_vm12, %vm418_vm3  ;;  %vm497_vm3 = vcmp.lt.s32.totalorder %v1077_v58, 1 }
 0x260   : > { %v612_v7 = vsel %vm610_vm7, %v598_v3, 0.0  ;;  %v613_v8 = vsel %vm611_vm8, %v599_v4, 0.0  ;;  %vm481_vm7 = vcmp.eq.s32.totalorder %v476_v32, 1  ;;  %vm482_vm8 = vcmp.eq.s32.totalorder %v480_v33, 1 }
 0x261   : > { %v616_v10 = vrot.slane %v612_v7, 4  ;;  %v617_v11 = vrot.slane %v613_v8, 4  ;;  %v420_v44 = vsel %vm419_vm6, 1, %v917_v20 }
 0x262   : > { %v544_v14 = vpop.permute.xlu1 %543  ;;  %v424_v59 = vrot.slane %v420_v44, %v1066_v54  ;;  %v428_v60 = vrot.slane %v420_v44, %v1069_v55 }
 0x263   : > { %620 = vst [vmem:[#allocation2 + $0x40] sm:$0xf0] %v616_v10  ;;  %621 = vst [vmem:[#allocation2 + $0x38] sm:$0xf0] %v617_v11  ;;  %v546_v15 = vsel %vm545_vm9, %v542_v52, %v544_v14  ;;  %v547_v16 = vsel %vm545_vm9, %v544_v14, %v542_v52  ;;  %vm1150_vm9 = vcmp.eq.s32.totalorder %v504_v40, 1 }
 0x264   : > { %v561_v17 = vsel %vm1091_vm10, %v546_v15, 0.0  ;;  %v562_v18 = vsel %vm1095_vm11, %v547_v16, 0.0  ;;  %vm1154_vm10 = vcmp.eq.s32.totalorder %v508_v41, 1  ;;  %vm414_vm11 = vcmp.lt.s32.totalorder %v1077_v58, 17 }
 0x265   : > { %v565_v22 = vrot.slane %v561_v17, 4  ;;  %v566_v23 = vrot.slane %v562_v18, 4 }
 0x266   : > { %v574_v25 = vpop.permute.xlu1 %573 }
 0x267   : > { %569 = vst [vmem:[#allocation2 + $0x8] sm:$0xf0] %v565_v22  ;;  %570 = vst [vmem:[#allocation2 + $0x20] sm:$0xf0] %v566_v23  ;;  %v576_v27 = vsel %vm575_vm13, %v572_v53, %v574_v25  ;;  %v577_v28 = vsel %vm575_vm13, %v574_v25, %v572_v53  ;;  %vm430_vm13 = vcmp.eq.s32.totalorder %v428_v60, 1  ;;  %v622_v22 = vld [vmem:[%s1225_s7] sm:$0xff] }
 0x268   : > { %v589_v29 = vsel %vm1118_vm15, %v576_v27, 0.0  ;;  %v590_v30 = vsel %vm588_vm0, %v577_v28, 0.0 }
 0x269   : > { %591 = vst [vmem:[#allocation2 + $0x40] sm:$0xf] %v589_v29  ;;  %592 = vst [vmem:[#allocation2 + $0x38] sm:$0xf] %v590_v30 }
 0x26a   : > { %v522_v35 = vpop.permute.xlu1 %521 }
 0x26b   : > { %v524_v36 = vsel %vm523_vm1, %v520_v56, %v522_v35  ;;  %v525_v37 = vsel %vm523_vm1, %v522_v35, %v520_v56  ;;  %vm633_vm1 = vcmask 326656  }
 0x26c   : > { %v537_v38 = vsel %vm1128_vm2, %v524_v36, 0.0  ;;  %v538_v39 = vsel %vm536_vm4, %v525_v37, 0.0 }
 0x26d   : > { %539 = vst [vmem:[#allocation2 + $0x8] sm:$0xf] %v537_v38  ;;  %540 = vst [vmem:[#allocation2 + $0x20] sm:$0xf] %v538_v39 }
 0x26e   : > { %v466_v43 = vpop.permute.xlu1 %465 }
 0x26f   : > { %v468_v45 = vsel %vm467_vm5, %v1082_v62, %v466_v43  ;;  %v469_v46 = vsel %vm467_vm5, %v466_v43, %v1082_v62  ;;  %v448_v62 = vsel %vm417_vm12, 1, %v917_v20  ;;  %vm429_vm12 = vcmp.eq.s32.totalorder %v424_v59, 1 }
 0x270   : > { %v483_v47 = vsel %vm481_vm7, %v469_v46, 0.0  ;;  %v484_v48 = vsel %vm482_vm8, %v468_v45, 0.0  ;;  %v632_v49 = vld [vmem:[#allocation2 + $0x38] sm:$0xff]  ;;  %v631_v51 = vld [vmem:[#allocation2 + $0x40] sm:$0xff]  ;;  %v452_v20 = vrot.slane %v448_v62, %v1066_v54  ;;  %v456_v50 = vrot.slane %v448_v62, %v1069_v55 }
 0x271   : > { %v487_v56 = vrot.slane %v483_v47, 4  ;;  %v488_v57 = vrot.slane %v484_v48, 4  ;;  %659 = vmatprep.subr.mxu0 %v632_v49 }
 0x272   : > { %660 = vmatpush1.msra.mxu0 %v631_v51  ;;  %v496_v61 = vpop.permute.xlu1 %495  ;;  %vm457_vm15 = vcmp.eq.s32.totalorder %v452_v20, 1  ;;  %vm458_vm0 = vcmp.eq.s32.totalorder %v456_v50, 1 }
 0x273   : > { %491 = vst [vmem:[#allocation2 + $0x18] sm:$0xf0] %v487_v56  ;;  %492 = vst [vmem:[#allocation2 + $0x10] sm:$0xf0] %v488_v57  ;;  %v498_v63 = vsel %vm497_vm3, %v494_v42, %v496_v61  ;;  %v499_v0 = vsel %vm497_vm3, %v496_v61, %v494_v42 }
 0x274   : > { %v511_v2 = vsel %vm1150_vm9, %v499_v0, 0.0  ;;  %v512_v3 = vsel %vm1154_vm10, %v498_v63, 0.0  ;;  %v630_v4 = vld [vmem:[#allocation2 + $0x20] sm:$0xff]  ;;  %v629_v5 = vld [vmem:[#allocation2 + $0x8] sm:$0xff] }
 0x275   : > { %513 = vst [vmem:[#allocation2 + $0x48] sm:$0xf] %v511_v2  ;;  %514 = vst [vmem:[#allocation2 + $0x28] sm:$0xf] %v512_v3  ;;  %661 = vmatprep.subr.mxu0 %v630_v4 }
 0x276   : > { %662 = vmatpush1.msra.mxu0 %v629_v5  ;;  %v411_v6 = vpop.permute.xlu1 %410 }
 0x277   : > { %v415_v7 = vsel %vm414_vm11, %v409_v1, %v411_v6  ;;  %v416_v8 = vsel %vm414_vm11, %v411_v6, %v409_v1 }
 0x278   : > { %v431_v9 = vsel %vm429_vm12, %v416_v8, 0.0  ;;  %v432_v10 = vsel %vm430_vm13, %v415_v7, 0.0 }
 0x279   : > { %v435_v11 = vrot.slane %v431_v9, 4  ;;  %v436_v12 = vrot.slane %v432_v10, 4 }
 0x27a   : > { %v444_v14 = vpop.permute.xlu1 %443 }
 0x27b   : > { %439 = vst [vmem:[#allocation2 + $0x30] sm:$0xf0] %v435_v11  ;;  %440 = vst [vmem:[#allocation2] sm:$0xf0] %v436_v12  ;;  %v446_v15 = vsel %vm445_vm14, %v442_v13, %v444_v14  ;;  %v447_v54 = vsel %vm445_vm14, %v444_v14, %v442_v13 }
 0x27c   : > { %v459_v16 = vsel %vm457_vm15, %v447_v54, 0.0  ;;  %v460_v55 = vsel %vm458_vm0, %v446_v15, 0.0  ;;  %v628_v17 = vld [vmem:[#allocation2 + $0x28] sm:$0xff] }
 0x27d   : > { %v627_v18 = vld [vmem:[#allocation2 + $0x48] sm:$0xff]  ;;  %461 = vst [vmem:[#allocation2 + $0x18] sm:$0xf] %v459_v16  ;;  %462 = vst [vmem:[#allocation2 + $0x10] sm:$0xf] %v460_v55  ;;  %663 = vmatprep.subr.mxu0 %v628_v17 }
 0x27e   : > { %664 = vmatpush1.msra.mxu0 %v627_v18 }
 0x282   : > { %v624_v21 = vld [vmem:[#allocation2] sm:$0xff]  ;;  %v623_v23 = vld [vmem:[#allocation2 + $0x30] sm:$0xff] }
 0x284   : > { %v626_v58 = vld [vmem:[#allocation2 + $0x10] sm:$0xff]  ;;  %v625_v19 = vld [vmem:[#allocation2 + $0x18] sm:$0xff] }
 0x285   : > { %665 = vmatprep.subr.mxu0 %v626_v58 }
 0x286   : > { %666 = vmatpush1.msra.mxu0 %v625_v19 }
 0x287   : > { %667 = vmatprep.subr.mxu0 %v624_v21 }
 0x288   : > { %668 = vmatpush1.msra.mxu0 %v623_v23 }
 0x289   : > { %791 = vmatmul.mubr.msk.f32.vlgmr.msra.gmra.mxu0 %vm633_vm1, %v622_v22 }
 0x349   : > { %v703_v24 = vpop.f32.mrf.mxu0 }
 0x34a   : > { %708 = vst [vmem:[%s298_s20] sm:$0xff] %v703_v24 }
 0x34b   : > { %v705_v25 = vpop.f32.mrf.mxu0 }
 0x34c   : > { %709 = vst [vmem:[%s298_s20 + $0x8] sm:$0xff] %v705_v25 }
 0x34d   : > { %867 = shalt.err (!%p864_p3)
}
 0x34e   : > { %s868_s17 = scalar_lea.hbm %s723_s25, 256  ;;  %s872_s20 = scalar_lea.hbm %s1226_s8, 512 }
 0x34f   : > { %p869_p4 = scmp.ne.s32.totalorder %s723_s25, %s868_s17  ;;  %p873_p9 = scmp.lt.s32.totalorder %s723_s25, %s1226_s8 }
 0x350   : > { %p874_p10 = scmp.lt.s32.totalorder %s872_s20, %s868_s17 }
 0x351   : > { %p870_p7 = pnand %p869_p4, %p1011_p5 }
 0x352   : > { %p875_p11 = por %p874_p10, %p873_p9 }
 0x353   : > { %p871_p8 = pneg %p870_p7 }
 0x355   : > { %p876_p12 = pnand %p875_p11, %p871_p8 }
 0x357   : > { %879 = shalt.err (!%p876_p12)
}
 0x358   : > { %799 = dma.vmem_to_hbm [thread:$0]  (%p1011_p5), %s1180_s21, 256, %s723_s25, %s711_s26  }
 0x359 PF: > { %p805_p13 = scmp.ge.s32.totalorder %s914_s30, 2  ;;  %s737_s24 = sand.u32 1, %s902_s27  }
 0x35a   : > { %s738_s10 = scalar_lea.sflag [#allocation4], %s737_s24 }
 0x35b   : > { %p802_p0 = pnand %p805_p13, %p1015_p6 }
 0x35d   : > { %p803_p1 = pneg %p802_p0 }
 0x35f   : > { %897 = dma.done.wait (%p803_p1), %s738_s10, 256  }
 0x360   : > { %899 = vsyncadd (%p803_p1), %s738_s10, 4294967040  ;;  %p18_p2 = scmp.ge.s32.totalorder %s998_s11, 4   ;;  %s1241_s27 = smov %s906_s28 }
 0x361   : > { %s1242_s28 = smov %s910_s29  ;;  %s1243_s29 = smov %s1009_s14 }
 0x362   : > { %s1244_s30 = smov %s998_s11  ;;  %20 = sbr.rel (!%p18_p2) target bundleno = 3 (0x3), region = 87 }
 0x367   :  { %743 = vsyncpa [#allocation4], 1 }
 0x368   :  { %745 = vsyncpa [#allocation4 + $0x1], 1 }

</bundles_post_ra>
